<compile_context>
chip_gen: v7x
topology: tpu7x:2x2x1
jax: 0.10.0
libtpu: 0.0.40
codegen_flags: <defaults>
</compile_context>

<pallas_src>
import functools
import math

import jax
import jax.numpy as jnp
from jax import lax
from jax.experimental import pallas as pl
from jax.experimental.pallas import tpu as pltpu


# ---------------------------------------------------------------------------
# tiling helpers
# ---------------------------------------------------------------------------
def _pick_row_tile(n, max_tile):
    """Row tile + padded row count. Small n -> one full block; large n -> fixed
    tile (max_tile must be a multiple of 8), rows padded up to a multiple of it."""
    if n <= max_tile:
        return n, n
    n_pad = pl.cdiv(n, max_tile) * max_tile
    return max_tile, n_pad


def _pick_group(hb, target=8):
    """Largest divisor of hb <= target, keeping >=2 grid steps when hb >= 2
    (so v7x's two TensorCores keep a parallel axis to split)."""
    best = 1
    for g in range(1, min(hb, target) + 1):
        if hb % g == 0 and (hb // g >= 2 or hb == 1):
            best = g
    return best


def _pad_rows(a, n_pad):
    n = a.shape[0]
    if n_pad == n:
        return a
    return jnp.pad(a, ((0, n_pad - n), (0, 0)))


# ---------------------------------------------------------------------------
# kernel bodies
# ---------------------------------------------------------------------------
def _linear_kernel(x_ref, w_ref, b_ref, o_ref):
    acc = jnp.dot(x_ref[...], w_ref[...], preferred_element_type=jnp.float32)
    o_ref[...] = (acc + b_ref[...]).astype(o_ref.dtype)


def _kv_kernel(y_ref, wk_ref, bk_ref, wv_ref, bv_ref, k_ref, v_ref):
    yb = y_ref[...]
    k_ref[...] = (jnp.dot(yb, wk_ref[...], preferred_element_type=jnp.float32)
                  + bk_ref[...]).astype(k_ref.dtype)
    v_ref[...] = (jnp.dot(yb, wv_ref[...], preferred_element_type=jnp.float32)
                  + bv_ref[...]).astype(v_ref.dtype)


def _qkv_kernel(x_ref, y_ref, wq_ref, bq_ref, wk_ref, bk_ref, wv_ref, bv_ref,
                q_ref, k_ref, v_ref):
    # Fused projections: x and y tiles each read once, three MXU matmuls.
    xb = x_ref[...]
    yb = y_ref[...]
    q_ref[...] = (jnp.dot(xb, wq_ref[...], preferred_element_type=jnp.float32)
                  + bq_ref[...]).astype(q_ref.dtype)
    k_ref[...] = (jnp.dot(yb, wk_ref[...], preferred_element_type=jnp.float32)
                  + bk_ref[...]).astype(k_ref.dtype)
    v_ref[...] = (jnp.dot(yb, wv_ref[...], preferred_element_type=jnp.float32)
                  + bv_ref[...]).astype(v_ref.dtype)


def _attn_kernel(q_ref, k_ref, v_ref, o_ref, m_ref, l_ref, acc_ref, *,
                 norm_fact, sk_valid, tk):
    """One grid step: group of (head,batch) slabs x one Sq tile x one Sk tile,
    online-softmax accumulation over the (innermost, 'arbitrary') Sk axis."""
    j = pl.program_id(2)

    @pl.when(j == 0)
    def _():
        m_ref[...] = jnp.full(m_ref.shape, -jnp.inf, dtype=m_ref.dtype)
        l_ref[...] = jnp.zeros(l_ref.shape, dtype=l_ref.dtype)
        acc_ref[...] = jnp.zeros(acc_ref.shape, dtype=acc_ref.dtype)

    # Fold the 1/sqrt(d_model) scale into the small (g, tq, dk_h) q tile.
    q = q_ref[...] * norm_fact
    k = k_ref[...]
    v = v_ref[...]

    # Scores: contract on dk_h, batched over the group axis. Operands keep the
    # input dtype (native MXU rate for bf16); accumulation is f32.
    s = jnp.einsum("gqd,gkd->gqk", q, k, preferred_element_type=jnp.float32)

    if sk_valid is not None:  # static python branch: Sk was padded -> mask cols
        col = j * tk + lax.broadcasted_iota(jnp.int32, s.shape, 2)
        s = jnp.where(col < sk_valid, s, -jnp.inf)

    m_prev = m_ref[...]
    m_new = jnp.maximum(m_prev, jnp.max(s, axis=-1, keepdims=True))
    alpha = jnp.exp(m_prev - m_new)                      # EUP
    p = jnp.exp(s - m_new)                               # EUP

    l_ref[...] = alpha * l_ref[...] + jnp.sum(p, axis=-1, keepdims=True)
    acc_ref[...] = alpha * acc_ref[...] + jnp.einsum(
        "gqk,gkd->gqd", p.astype(v.dtype), v, preferred_element_type=jnp.float32)
    m_ref[...] = m_new

    @pl.when(j == pl.num_programs(2) - 1)
    def _():
        inv = pl.reciprocal(l_ref[...], approx=True)     # EUP slot, ~free
        o_ref[...] = (acc_ref[...] * inv).astype(o_ref.dtype)


# ---------------------------------------------------------------------------
# pallas_call wrappers
# ---------------------------------------------------------------------------
def _linear(x2, w, b, *, max_row_tile=512):
    """x2: (N, Din) @ w (Din, Dout) + b -> (N, Dout)."""
    n, d_in = x2.shape
    d_out = w.shape[1]
    tn, n_pad = _pick_row_tile(n, max_row_tile)
    x_p = _pad_rows(x2, n_pad)
    itemsize = jnp.dtype(x2.dtype).itemsize
    out = pl.pallas_call(
        _linear_kernel,
        out_shape=jax.ShapeDtypeStruct((n_pad, d_out), x2.dtype),
        grid=(n_pad // tn,),
        in_specs=[
            pl.BlockSpec((tn, d_in), lambda i: (i, 0)),
            pl.BlockSpec((d_in, d_out), lambda i: (0, 0)),
            pl.BlockSpec((1, d_out), lambda i: (0, 0)),
        ],
        out_specs=pl.BlockSpec((tn, d_out), lambda i: (i, 0)),
        compiler_params=pltpu.CompilerParams(dimension_semantics=("parallel",)),
        cost_estimate=pl.CostEstimate(
            flops=2 * n_pad * d_in * d_out,
            transcendentals=0,
            bytes_accessed=itemsize * (n_pad * d_in + d_in * d_out + d_out
                                       + n_pad * d_out),
        ),
    )(x_p, w, b.reshape(1, d_out))
    return out[:n] if n_pad != n else out


def _kv_proj(y2, wk, bk, wv, bv, *, max_row_tile=512):
    """y2: (N, Din) -> K (N, Dk), V (N, Dv); y2 read from HBM once."""
    n, d_in = y2.shape
    dk, dv = wk.shape[1], wv.shape[1]
    tn, n_pad = _pick_row_tile(n, max_row_tile)
    y_p = _pad_rows(y2, n_pad)
    itemsize = jnp.dtype(y2.dtype).itemsize
    k_out, v_out = pl.pallas_call(
        _kv_kernel,
        out_shape=(jax.ShapeDtypeStruct((n_pad, dk), y2.dtype),
                   jax.ShapeDtypeStruct((n_pad, dv), y2.dtype)),
        grid=(n_pad // tn,),
        in_specs=[
            pl.BlockSpec((tn, d_in), lambda i: (i, 0)),
            pl.BlockSpec((d_in, dk), lambda i: (0, 0)),
            pl.BlockSpec((1, dk), lambda i: (0, 0)),
            pl.BlockSpec((d_in, dv), lambda i: (0, 0)),
            pl.BlockSpec((1, dv), lambda i: (0, 0)),
        ],
        out_specs=(pl.BlockSpec((tn, dk), lambda i: (i, 0)),
                   pl.BlockSpec((tn, dv), lambda i: (i, 0))),
        compiler_params=pltpu.CompilerParams(dimension_semantics=("parallel",)),
        cost_estimate=pl.CostEstimate(
            flops=2 * n_pad * d_in * (dk + dv),
            transcendentals=0,
            bytes_accessed=itemsize * (n_pad * d_in + d_in * (dk + dv) + dk + dv
                                       + n_pad * (dk + dv)),
        ),
    )(y_p, wk, bk.reshape(1, dk), wv, bv.reshape(1, dv))
    if n_pad != n:
        k_out, v_out = k_out[:n], v_out[:n]
    return k_out, v_out


def _qkv_proj(x2, y2, wq, bq, wk, bk, wv, bv, *, max_row_tile=512):
    """Fused Q/K/V projections (x2 and y2 must have the same row count)."""
    n, d_in = x2.shape
    dk, dv = wq.shape[1], wv.shape[1]
    tn, n_pad = _pick_row_tile(n, max_row_tile)
    x_p = _pad_rows(x2, n_pad)
    y_p = _pad_rows(y2, n_pad)
    itemsize = jnp.dtype(x2.dtype).itemsize
    q_out, k_out, v_out = pl.pallas_call(
        _qkv_kernel,
        out_shape=(jax.ShapeDtypeStruct((n_pad, dk), x2.dtype),
                   jax.ShapeDtypeStruct((n_pad, dk), y2.dtype),
                   jax.ShapeDtypeStruct((n_pad, dv), y2.dtype)),
        grid=(n_pad // tn,),
        in_specs=[
            pl.BlockSpec((tn, d_in), lambda i: (i, 0)),
            pl.BlockSpec((tn, d_in), lambda i: (i, 0)),
            pl.BlockSpec((d_in, dk), lambda i: (0, 0)),
            pl.BlockSpec((1, dk), lambda i: (0, 0)),
            pl.BlockSpec((d_in, dk), lambda i: (0, 0)),
            pl.BlockSpec((1, dk), lambda i: (0, 0)),
            pl.BlockSpec((d_in, dv), lambda i: (0, 0)),
            pl.BlockSpec((1, dv), lambda i: (0, 0)),
        ],
        out_specs=(pl.BlockSpec((tn, dk), lambda i: (i, 0)),
                   pl.BlockSpec((tn, dk), lambda i: (i, 0)),
                   pl.BlockSpec((tn, dv), lambda i: (i, 0))),
        compiler_params=pltpu.CompilerParams(dimension_semantics=("parallel",)),
        cost_estimate=pl.CostEstimate(
            flops=2 * n_pad * d_in * (2 * dk + dv),
            transcendentals=0,
            bytes_accessed=itemsize * (2 * n_pad * d_in + d_in * (2 * dk + dv)
                                       + 2 * dk + dv + n_pad * (2 * dk + dv)),
        ),
    )(x_p, y_p, wq, bq.reshape(1, dk), wk, bk.reshape(1, dk),
      wv, bv.reshape(1, dv))
    if n_pad != n:
        q_out, k_out, v_out = q_out[:n], k_out[:n], v_out[:n]
    return q_out, k_out, v_out


def _attention(q3, k3, v3, norm_fact, *, max_sq_tile=256, max_sk_tile=512):
    """q3: (H*B, Sq, dk_h); k3/v3: (H*B, Sk, *) -> (H*B, Sq, dv_h)."""
    hb, sq, dkh = q3.shape
    sk = k3.shape[1]
    dvh = v3.shape[2]
    dtype = q3.dtype

    g = _pick_group(hb)
    tq, sq_pad = _pick_row_tile(sq, max_sq_tile)
    tk, sk_pad = _pick_row_tile(sk, max_sk_tile)

    if sq_pad != sq:  # padded query rows are garbage, sliced off afterwards
        q3 = jnp.pad(q3, ((0, 0), (0, sq_pad - sq), (0, 0)))
    if sk_pad != sk:  # padded key columns are masked to -inf inside the kernel
        k3 = jnp.pad(k3, ((0, 0), (0, sk_pad - sk), (0, 0)))
        v3 = jnp.pad(v3, ((0, 0), (0, sk_pad - sk), (0, 0)))
    sk_valid = sk if sk_pad != sk else None

    kern = functools.partial(_attn_kernel, norm_fact=norm_fact,
                             sk_valid=sk_valid, tk=tk)
    itemsize = jnp.dtype(dtype).itemsize
    out = pl.pallas_call(
        kern,
        out_shape=jax.ShapeDtypeStruct((hb, sq_pad, dvh), dtype),
        grid=(hb // g, sq_pad // tq, sk_pad // tk),
        in_specs=[
            pl.BlockSpec((g, tq, dkh), lambda b, i, j: (b, i, 0)),
            pl.BlockSpec((g, tk, dkh), lambda b, i, j: (b, j, 0)),
            pl.BlockSpec((g, tk, dvh), lambda b, i, j: (b, j, 0)),
        ],
        out_specs=pl.BlockSpec((g, tq, dvh), lambda b, i, j: (b, i, 0)),
        scratch_shapes=[
            pltpu.VMEM((g, tq, 1), jnp.float32),      # running max m
            pltpu.VMEM((g, tq, 1), jnp.float32),      # running denom l
            pltpu.VMEM((g, tq, dvh), jnp.float32),    # unnormalized accumulator
        ],
        compiler_params=pltpu.CompilerParams(
            dimension_semantics=("parallel", "parallel", "arbitrary")),
        cost_estimate=pl.CostEstimate(
            flops=2 * hb * sq_pad * sk_pad * (dkh + dvh),
            transcendentals=hb * sq_pad * sk_pad,
            bytes_accessed=itemsize * hb * (sq_pad * dkh + sk_pad * (dkh + dvh)
                                            + sq_pad * dvh),
        ),
    )(q3, k3, v3)
    if sq_pad != sq:
        out = out[:, :sq, :]
    return out


# ---------------------------------------------------------------------------
# full module forward
# ---------------------------------------------------------------------------
def multihead_attention(x, y, wq, bq, wk, bk, wv, bv, wo, bo, *, n_heads,
                        max_row_tile=512, max_sq_tile=256, max_sk_tile=512):
    """Weights in PyTorch nn.Linear layout: w* is (out_features, in_features)."""
    b_sz, sq, d_model = x.shape
    _, sk, _ = y.shape
    dim_k = wq.shape[0]
    dim_v = wv.shape[0]
    dk_h = dim_k // n_heads
    dv_h = dim_v // n_heads
    norm_fact = 1.0 / math.sqrt(d_model)

    x2 = x.reshape(b_sz * sq, d_model)          # free row-major reshapes
    y2 = y.reshape(b_sz * sk, d_model)

    if sq == sk:
        # Fused Q/K/V projection: one launch; x and y each read from HBM once.
        q2, k2, v2 = _qkv_proj(x2, y2, wq.T, bq, wk.T, bk, wv.T, bv,
                               max_row_tile=max_row_tile)
    else:
        q2 = _linear(x2, wq.T, bq, max_row_tile=max_row_tile)
        k2, v2 = _kv_proj(y2, wk.T, bk, wv.T, bv, max_row_tile=max_row_tile)

    # The module's "head split" is a raw row-major reshape (bug-faithful; free).
    q3 = q2.reshape(n_heads * b_sz, sq, dk_h)
    k3 = k2.reshape(n_heads * b_sz, sk, dk_h)
    v3 = v2.reshape(n_heads * b_sz, sk, dv_h)

    o3 = _attention(q3, k3, v3, norm_fact,
                    max_sq_tile=max_sq_tile, max_sk_tile=max_sk_tile)

    # matmul(P, V).reshape(B, Sq, -1): again a raw row-major reshape (free).
    o2 = o3.reshape(b_sz * sq, dim_v)
    out = _linear(o2, wo.T, bo, max_row_tile=max_row_tile)
    return out.reshape(b_sz, sq, d_model)


# ---------------------------------------------------------------------------
# pure-JAX reference (mirrors the PyTorch forward, incl. the discarded mask)
# ---------------------------------------------------------------------------
def _reference(x, y, wq, bq, wk, bk, wv, bv, wo, bo, n_heads):
    b_sz, sq, d_model = x.shape
    _, sk, _ = y.shape
    dim_k = wq.shape[0]
    dim_v = wv.shape[0]
    q = (x @ wq.T + bq).reshape(n_heads, b_sz, sq, dim_k // n_heads)
    k = (y @ wk.T + bk).reshape(n_heads, b_sz, sk, dim_k // n_heads)
    v = (y @ wv.T + bv).reshape(n_heads, b_sz, sk, dim_v // n_heads)
    s = jnp.einsum("hbqd,hbkd->hbqk", q, k) / math.sqrt(d_model)
    # mask: computed then discarded by the original module -> no effect
    p = jax.nn.softmax(s, axis=-1)
    o = jnp.einsum("hbqk,hbkd->hbqd", p, v).reshape(b_sz, sq, dim_v)
    return o @ wo.T + bo


if __name__ == "__main__":
    def init_linear(kw_, kb_, d_in, d_out):
        bound = 1.0 / math.sqrt(d_in)
        w = jax.random.uniform(kw_, (d_out, d_in), minval=-bound, maxval=bound,
                               dtype=jnp.float32)
        b = jax.random.uniform(kb_, (d_out,), minval=-bound, maxval=bound,
                               dtype=jnp.float32)
        return w, b

    def run_case(key, b_sz, sq, sk, d_model, dim_k, dim_v, n_heads, **tiles):
        keys = jax.random.split(key, 10)
        x = jax.random.normal(keys[0], (b_sz, sq, d_model), dtype=jnp.float32)
        y = jax.random.normal(keys[1], (b_sz, sk, d_model), dtype=jnp.float32)
        wq, bq = init_linear(keys[2], keys[3], d_model, dim_k)
        wk, bk = init_linear(keys[4], keys[5], d_model, dim_k)
        wv, bv = init_linear(keys[6], keys[7], d_model, dim_v)
        wo, bo = init_linear(keys[8], keys[9], dim_v, d_model)

        fwd = jax.jit(functools.partial(multihead_attention,
                                        n_heads=n_heads, **tiles))
        out = jax.block_until_ready(fwd(x, y, wq, bq, wk, bk, wv, bv, wo, bo))
        ref = _reference(x, y, wq, bq, wk, bk, wv, bv, wo, bo, n_heads)
        assert out.shape == ref.shape
        err = float(jnp.max(jnp.abs(out - ref)))
        # pl.reciprocal(approx=True) in the softmax denominator -> loosened but
        # still bug-catching tolerance (structural bugs give O(0.1-1) errors).
        assert jnp.allclose(out, ref, atol=2e-2, rtol=2e-2), err
        return err

    root = jax.random.PRNGKey(0)
    k1, k2, k3 = jax.random.split(root, 3)

    # 1) module-native small shape: fused QKV path, single-tile attention
    run_case(k1, b_sz=2, sq=8, sk=8, d_model=32, dim_k=32, dim_v=32, n_heads=4)

    # 2) forces the tiled online-softmax path: Sq/Sk padding + key-column masking
    run_case(k2, b_sz=2, sq=160, sk=160, d_model=32, dim_k=64, dim_v=64,
             n_heads=4, max_row_tile=128, max_sq_tile=64, max_sk_tile=64)

    # 3) cross-attention with Sq != Sk: separate Q + fused KV projection path
    run_case(k3, b_sz=2, sq=8, sk=24, d_model=32, dim_k=32, dim_v=32, n_heads=4)

    print("KERNEL_OK")
</pallas_src>

<mosaic_0001>
module attributes {stable_mosaic.version = 11 : i64} {
  func.func @_qkv_kernel(%arg0: i32, %arg1: memref<16x32xf32, #tpu.memory_space<vmem>>, %arg2: memref<16x32xf32, #tpu.memory_space<vmem>>, %arg3: memref<32x32xf32, #tpu.memory_space<vmem>>, %arg4: memref<1x32xf32, #tpu.memory_space<vmem>>, %arg5: memref<32x32xf32, #tpu.memory_space<vmem>>, %arg6: memref<1x32xf32, #tpu.memory_space<vmem>>, %arg7: memref<32x32xf32, #tpu.memory_space<vmem>>, %arg8: memref<1x32xf32, #tpu.memory_space<vmem>>, %arg9: memref<16x32xf32, #tpu.memory_space<vmem>>, %arg10: memref<16x32xf32, #tpu.memory_space<vmem>>, %arg11: memref<16x32xf32, #tpu.memory_space<vmem>>) attributes {dimension_semantics = [#tpu.dimension_semantics<parallel>], iteration_bounds = array<i64: 1>, scalar_prefetch = 0 : i64, scratch_operands = 0 : i64, tpu.core_type = #tpu.core_type<tc>, window_params = [{transform_indices = @transform_0, window_bounds = array<i64: 16, 32>}, {transform_indices = @transform_1, window_bounds = array<i64: 16, 32>}, {pipeline_mode = #tpu.pipeline_mode<synchronous>, transform_indices = @transform_2, window_bounds = array<i64: 32, 32>}, {pipeline_mode = #tpu.pipeline_mode<synchronous>, transform_indices = @transform_3, window_bounds = array<i64: 1, 32>}, {pipeline_mode = #tpu.pipeline_mode<synchronous>, transform_indices = @transform_4, window_bounds = array<i64: 32, 32>}, {pipeline_mode = #tpu.pipeline_mode<synchronous>, transform_indices = @transform_5, window_bounds = array<i64: 1, 32>}, {pipeline_mode = #tpu.pipeline_mode<synchronous>, transform_indices = @transform_6, window_bounds = array<i64: 32, 32>}, {pipeline_mode = #tpu.pipeline_mode<synchronous>, transform_indices = @transform_7, window_bounds = array<i64: 1, 32>}, {transform_indices = @transform_8, window_bounds = array<i64: 16, 32>}, {transform_indices = @transform_9, window_bounds = array<i64: 16, 32>}, {transform_indices = @transform_10, window_bounds = array<i64: 16, 32>}]} {
    %c0 = arith.constant 0 : index
    %c0_0 = arith.constant 0 : index
    %0 = vector.load %arg1[%c0, %c0_0] : memref<16x32xf32, #tpu.memory_space<vmem>>, vector<16x32xf32>
    %c0_1 = arith.constant 0 : index
    %c0_2 = arith.constant 0 : index
    %1 = vector.load %arg2[%c0_1, %c0_2] : memref<16x32xf32, #tpu.memory_space<vmem>>, vector<16x32xf32>
    %c0_3 = arith.constant 0 : index
    %c0_4 = arith.constant 0 : index
    %2 = vector.load %arg3[%c0_3, %c0_4] : memref<32x32xf32, #tpu.memory_space<vmem>>, vector<32x32xf32>
    %cst = arith.constant dense<0.000000e+00> : vector<16x32xf32>
    %3 = tpu.matmul %0, %2, %cst {dimension_numbers = #tpu.dot_dimension_numbers<[1], [0], [0], [1], [0, 0, 1, 1], [], []>} : vector<16x32xf32>, vector<32x32xf32>, vector<16x32xf32> -> vector<16x32xf32>
    %c0_5 = arith.constant 0 : index
    %c0_6 = arith.constant 0 : index
    %4 = vector.load %arg4[%c0_5, %c0_6] : memref<1x32xf32, #tpu.memory_space<vmem>>, vector<1x32xf32>
    %5 = vector.broadcast %4 : vector<1x32xf32> to vector<16x32xf32>
    %6 = arith.addf %3, %5 : vector<16x32xf32>
    %c0_7 = arith.constant 0 : index
    %c0_8 = arith.constant 0 : index
    %7 = vector.load %arg9[%c0_7, %c0_8] : memref<16x32xf32, #tpu.memory_space<vmem>>, vector<16x32xf32>
    tpu.vector_store %arg9[%c0_7, %c0_8], %6 {strides = array<i32>} : memref<16x32xf32, #tpu.memory_space<vmem>>, vector<16x32xf32>,
    %c0_9 = arith.constant 0 : index
    %c0_10 = arith.constant 0 : index
    %8 = vector.load %arg5[%c0_9, %c0_10] : memref<32x32xf32, #tpu.memory_space<vmem>>, vector<32x32xf32>
    %cst_11 = arith.constant dense<0.000000e+00> : vector<16x32xf32>
    %9 = tpu.matmul %1, %8, %cst_11 {dimension_numbers = #tpu.dot_dimension_numbers<[1], [0], [0], [1], [0, 0, 1, 1], [], []>} : vector<16x32xf32>, vector<32x32xf32>, vector<16x32xf32> -> vector<16x32xf32>
    %c0_12 = arith.constant 0 : index
    %c0_13 = arith.constant 0 : index
    %10 = vector.load %arg6[%c0_12, %c0_13] : memref<1x32xf32, #tpu.memory_space<vmem>>, vector<1x32xf32>
    %11 = vector.broadcast %10 : vector<1x32xf32> to vector<16x32xf32>
    %12 = arith.addf %9, %11 : vector<16x32xf32>
    %c0_14 = arith.constant 0 : index
    %c0_15 = arith.constant 0 : index
    %13 = vector.load %arg10[%c0_14, %c0_15] : memref<16x32xf32, #tpu.memory_space<vmem>>, vector<16x32xf32>
    tpu.vector_store %arg10[%c0_14, %c0_15], %12 {strides = array<i32>} : memref<16x32xf32, #tpu.memory_space<vmem>>, vector<16x32xf32>,
    %c0_16 = arith.constant 0 : index
    %c0_17 = arith.constant 0 : index
    %14 = vector.load %arg7[%c0_16, %c0_17] : memref<32x32xf32, #tpu.memory_space<vmem>>, vector<32x32xf32>
    %cst_18 = arith.constant dense<0.000000e+00> : vector<16x32xf32>
    %15 = tpu.matmul %1, %14, %cst_18 {dimension_numbers = #tpu.dot_dimension_numbers<[1], [0], [0], [1], [0, 0, 1, 1], [], []>} : vector<16x32xf32>, vector<32x32xf32>, vector<16x32xf32> -> vector<16x32xf32>
    %c0_19 = arith.constant 0 : index
    %c0_20 = arith.constant 0 : index
    %16 = vector.load %arg8[%c0_19, %c0_20] : memref<1x32xf32, #tpu.memory_space<vmem>>, vector<1x32xf32>
    %17 = vector.broadcast %16 : vector<1x32xf32> to vector<16x32xf32>
    %18 = arith.addf %15, %17 : vector<16x32xf32>
    %c0_21 = arith.constant 0 : index
    %c0_22 = arith.constant 0 : index
    %19 = vector.load %arg11[%c0_21, %c0_22] : memref<16x32xf32, #tpu.memory_space<vmem>>, vector<16x32xf32>
    tpu.vector_store %arg11[%c0_21, %c0_22], %18 {strides = array<i32>} : memref<16x32xf32, #tpu.memory_space<vmem>>, vector<16x32xf32>,
    return
  }
  func.func @transform_0(%arg0: i32) -> (i32, i32) {
    %c0_i32 = arith.constant 0 : i32
    %c0_i32_0 = arith.constant 0 : i32
    return %arg0, %c0_i32 : i32, i32
  }
  func.func @transform_1(%arg0: i32) -> (i32, i32) {
    %c0_i32 = arith.constant 0 : i32
    %c0_i32_0 = arith.constant 0 : i32
    return %arg0, %c0_i32 : i32, i32
  }
  func.func @transform_2(%arg0: i32) -> (i32, i32) {
    %c0_i32 = arith.constant 0 : i32
    %c0_i32_0 = arith.constant 0 : i32
    %c0_i32_1 = arith.constant 0 : i32
    return %c0_i32, %c0_i32_0 : i32, i32
  }
  func.func @transform_3(%arg0: i32) -> (i32, i32) {
    %c0_i32 = arith.constant 0 : i32
    %c0_i32_0 = arith.constant 0 : i32
    %c0_i32_1 = arith.constant 0 : i32
    return %c0_i32, %c0_i32_0 : i32, i32
  }
  func.func @transform_4(%arg0: i32) -> (i32, i32) {
    %c0_i32 = arith.constant 0 : i32
    %c0_i32_0 = arith.constant 0 : i32
    %c0_i32_1 = arith.constant 0 : i32
    return %c0_i32, %c0_i32_0 : i32, i32
  }
  func.func @transform_5(%arg0: i32) -> (i32, i32) {
    %c0_i32 = arith.constant 0 : i32
    %c0_i32_0 = arith.constant 0 : i32
    %c0_i32_1 = arith.constant 0 : i32
    return %c0_i32, %c0_i32_0 : i32, i32
  }
  func.func @transform_6(%arg0: i32) -> (i32, i32) {
    %c0_i32 = arith.constant 0 : i32
    %c0_i32_0 = arith.constant 0 : i32
    %c0_i32_1 = arith.constant 0 : i32
    return %c0_i32, %c0_i32_0 : i32, i32
  }
  func.func @transform_7(%arg0: i32) -> (i32, i32) {
    %c0_i32 = arith.constant 0 : i32
    %c0_i32_0 = arith.constant 0 : i32
    %c0_i32_1 = arith.constant 0 : i32
    return %c0_i32, %c0_i32_0 : i32, i32
  }
  func.func @transform_8(%arg0: i32) -> (i32, i32) {
    %c0_i32 = arith.constant 0 : i32
    %c0_i32_0 = arith.constant 0 : i32
    return %arg0, %c0_i32 : i32, i32
  }
  func.func @transform_9(%arg0: i32) -> (i32, i32) {
    %c0_i32 = arith.constant 0 : i32
    %c0_i32_0 = arith.constant 0 : i32
    return %arg0, %c0_i32 : i32, i32
  }
  func.func @transform_10(%arg0: i32) -> (i32, i32) {
    %c0_i32 = arith.constant 0 : i32
    %c0_i32_0 = arith.constant 0 : i32
    return %arg0, %c0_i32 : i32, i32
  }
}

module attributes {stable_mosaic.version = 11 : i64} {
  func.func @_attn_kernel(%arg0: i32, %arg1: i32, %arg2: i32, %arg3: memref<4x8x8xf32, #tpu.memory_space<vmem>>, %arg4: memref<4x8x8xf32, #tpu.memory_space<vmem>>, %arg5: memref<4x8x8xf32, #tpu.memory_space<vmem>>, %arg6: memref<4x8x8xf32, #tpu.memory_space<vmem>>, %arg7: memref<4x8x1xf32, #tpu.memory_space<vmem>>, %arg8: memref<4x8x1xf32, #tpu.memory_space<vmem>>, %arg9: memref<4x8x8xf32, #tpu.memory_space<vmem>>) attributes {dimension_semantics = [#tpu.dimension_semantics<parallel>, #tpu.dimension_semantics<parallel>, #tpu.dimension_semantics<arbitrary>], iteration_bounds = array<i64: 2, 1, 1>, scalar_prefetch = 0 : i64, scratch_operands = 3 : i64, tpu.core_type = #tpu.core_type<tc>, window_params = [{transform_indices = @transform_0, window_bounds = array<i64: 4, 8, 8>}, {transform_indices = @transform_1, window_bounds = array<i64: 4, 8, 8>}, {transform_indices = @transform_2, window_bounds = array<i64: 4, 8, 8>}, {transform_indices = @transform_3, window_bounds = array<i64: 4, 8, 8>}]} {
    %c0_i32 = arith.constant 0 : i32
    %0 = arith.cmpi eq, %arg2, %c0_i32 : i32
    %1 = arith.extui %0 : i1 to i32
    %c0_i32_0 = arith.constant 0 : i32
    %2 = arith.cmpi ne, %1, %c0_i32_0 : i32
    scf.if %2 {
      %cst_33 = arith.constant 0xFF800000 : f32
      %34 = vector.broadcast %cst_33 : f32 to vector<4x8x1xf32>
      %c0_34 = arith.constant 0 : index
      %c0_35 = arith.constant 0 : index
      %c0_36 = arith.constant 0 : index
      %35 = vector.load %arg7[%c0_34, %c0_35, %c0_36] : memref<4x8x1xf32, #tpu.memory_space<vmem>>, vector<4x8x1xf32>
      tpu.vector_store %arg7[%c0_34, %c0_35, %c0_36], %34 {strides = array<i32>} : memref<4x8x1xf32, #tpu.memory_space<vmem>>, vector<4x8x1xf32>,
      %cst_37 = arith.constant 0.000000e+00 : f32
      %36 = vector.broadcast %cst_37 : f32 to vector<4x8x1xf32>
      %c0_38 = arith.constant 0 : index
      %c0_39 = arith.constant 0 : index
      %c0_40 = arith.constant 0 : index
      %37 = vector.load %arg8[%c0_38, %c0_39, %c0_40] : memref<4x8x1xf32, #tpu.memory_space<vmem>>, vector<4x8x1xf32>
      tpu.vector_store %arg8[%c0_38, %c0_39, %c0_40], %36 {strides = array<i32>} : memref<4x8x1xf32, #tpu.memory_space<vmem>>, vector<4x8x1xf32>,
      %cst_41 = arith.constant 0.000000e+00 : f32
      %38 = vector.broadcast %cst_41 : f32 to vector<4x8x8xf32>
      %c0_42 = arith.constant 0 : index
      %c0_43 = arith.constant 0 : index
      %c0_44 = arith.constant 0 : index
      %39 = vector.load %arg9[%c0_42, %c0_43, %c0_44] : memref<4x8x8xf32, #tpu.memory_space<vmem>>, vector<4x8x8xf32>
      tpu.vector_store %arg9[%c0_42, %c0_43, %c0_44], %38 {strides = array<i32>} : memref<4x8x8xf32, #tpu.memory_space<vmem>>, vector<4x8x8xf32>,
    } else {
    }
    %c0 = arith.constant 0 : index
    %c0_1 = arith.constant 0 : index
    %c0_2 = arith.constant 0 : index
    %3 = vector.load %arg3[%c0, %c0_1, %c0_2] : memref<4x8x8xf32, #tpu.memory_space<vmem>>, vector<4x8x8xf32>
    %cst = arith.constant 0.176776692 : f32
    %4 = vector.broadcast %cst : f32 to vector<4x8x8xf32>
    %5 = arith.mulf %3, %4 : vector<4x8x8xf32>
    %c0_3 = arith.constant 0 : index
    %c0_4 = arith.constant 0 : index
    %c0_5 = arith.constant 0 : index
    %6 = vector.load %arg4[%c0_3, %c0_4, %c0_5] : memref<4x8x8xf32, #tpu.memory_space<vmem>>, vector<4x8x8xf32>
    %c0_6 = arith.constant 0 : index
    %c0_7 = arith.constant 0 : index
    %c0_8 = arith.constant 0 : index
    %7 = vector.load %arg5[%c0_6, %c0_7, %c0_8] : memref<4x8x8xf32, #tpu.memory_space<vmem>>, vector<4x8x8xf32>
    "tpu.trace_start"() <{level = 10 : i32, message = "gqd,gkd->gqk"}> : () -> ()
    %cst_9 = arith.constant dense<0.000000e+00> : vector<4x8x8xf32>
    %8 = tpu.matmul %5, %6, %cst_9 {dimension_numbers = #tpu.dot_dimension_numbers<[2], [2], [1], [1], [0, 0, 0, 1, 1, 1], [0], [0]>} : vector<4x8x8xf32>, vector<4x8x8xf32>, vector<4x8x8xf32> -> vector<4x8x8xf32>
    "tpu.trace_stop"() : () -> ()
    %c0_10 = arith.constant 0 : index
    %c0_11 = arith.constant 0 : index
    %c0_12 = arith.constant 0 : index
    %9 = vector.load %arg7[%c0_10, %c0_11, %c0_12] : memref<4x8x1xf32, #tpu.memory_space<vmem>>, vector<4x8x1xf32>
    %cst_13 = arith.constant dense<0xFF800000> : vector<4x8xf32>
    %10 = vector.multi_reduction <maximumf>, %8, %cst_13 [2] : vector<4x8x8xf32> to vector<4x8xf32>
    %11 = vector.shape_cast %10 : vector<4x8xf32> to vector<4x8x1xf32>
    %12 = arith.maximumf %9, %11 : vector<4x8x1xf32>
    %13 = arith.subf %9, %12 : vector<4x8x1xf32>
    %14 = math.exp %13 : vector<4x8x1xf32>
    %15 = vector.broadcast %12 : vector<4x8x1xf32> to vector<4x8x8xf32>
    %16 = arith.subf %8, %15 : vector<4x8x8xf32>
    %17 = math.exp %16 : vector<4x8x8xf32>
    %c0_14 = arith.constant 0 : index
    %c0_15 = arith.constant 0 : index
    %c0_16 = arith.constant 0 : index
    %18 = vector.load %arg8[%c0_14, %c0_15, %c0_16] : memref<4x8x1xf32, #tpu.memory_space<vmem>>, vector<4x8x1xf32>
    %19 = arith.mulf %14, %18 : vector<4x8x1xf32>
    %cst_17 = arith.constant dense<0.000000e+00> : vector<4x8xf32>
    %20 = vector.multi_reduction <add>, %17, %cst_17 [2] : vector<4x8x8xf32> to vector<4x8xf32>
    %21 = vector.shape_cast %20 : vector<4x8xf32> to vector<4x8x1xf32>
    %22 = arith.addf %19, %21 : vector<4x8x1xf32>
    %c0_18 = arith.constant 0 : index
    %c0_19 = arith.constant 0 : index
    %c0_20 = arith.constant 0 : index
    %23 = vector.load %arg8[%c0_18, %c0_19, %c0_20] : memref<4x8x1xf32, #tpu.memory_space<vmem>>, vector<4x8x1xf32>
    tpu.vector_store %arg8[%c0_18, %c0_19, %c0_20], %22 {strides = array<i32>} : memref<4x8x1xf32, #tpu.memory_space<vmem>>, vector<4x8x1xf32>,
    %c0_21 = arith.constant 0 : index
    %c0_22 = arith.constant 0 : index
    %c0_23 = arith.constant 0 : index
    %24 = vector.load %arg9[%c0_21, %c0_22, %c0_23] : memref<4x8x8xf32, #tpu.memory_space<vmem>>, vector<4x8x8xf32>
    %25 = vector.broadcast %14 : vector<4x8x1xf32> to vector<4x8x8xf32>
    %26 = arith.mulf %25, %24 : vector<4x8x8xf32>
    "tpu.trace_start"() <{level = 10 : i32, message = "gqk,gkd->gqd"}> : () -> ()
    %cst_24 = arith.constant dense<0.000000e+00> : vector<4x8x8xf32>
    %27 = tpu.matmul %17, %7, %cst_24 {dimension_numbers = #tpu.dot_dimension_numbers<[2], [1], [1], [2], [0, 0, 0, 1, 1, 2], [0], [0]>} : vector<4x8x8xf32>, vector<4x8x8xf32>, vector<4x8x8xf32> -> vector<4x8x8xf32>
    "tpu.trace_stop"() : () -> ()
    %28 = arith.addf %26, %27 : vector<4x8x8xf32>
    %c0_25 = arith.constant 0 : index
    %c0_26 = arith.constant 0 : index
    %c0_27 = arith.constant 0 : index
    %29 = vector.load %arg9[%c0_25, %c0_26, %c0_27] : memref<4x8x8xf32, #tpu.memory_space<vmem>>, vector<4x8x8xf32>
    tpu.vector_store %arg9[%c0_25, %c0_26, %c0_27], %28 {strides = array<i32>} : memref<4x8x8xf32, #tpu.memory_space<vmem>>, vector<4x8x8xf32>,
    %c0_28 = arith.constant 0 : index
    %c0_29 = arith.constant 0 : index
    %c0_30 = arith.constant 0 : index
    %30 = vector.load %arg7[%c0_28, %c0_29, %c0_30] : memref<4x8x1xf32, #tpu.memory_space<vmem>>, vector<4x8x1xf32>
    tpu.vector_store %arg7[%c0_28, %c0_29, %c0_30], %12 {strides = array<i32>} : memref<4x8x1xf32, #tpu.memory_space<vmem>>, vector<4x8x1xf32>,
    %c0_i32_31 = arith.constant 0 : i32
    %31 = arith.cmpi eq, %arg2, %c0_i32_31 : i32
    %32 = arith.extui %31 : i1 to i32
    %c0_i32_32 = arith.constant 0 : i32
    %33 = arith.cmpi ne, %32, %c0_i32_32 : i32
    scf.if %33 {
      %c0_33 = arith.constant 0 : index
      %c0_34 = arith.constant 0 : index
      %c0_35 = arith.constant 0 : index
      %34 = vector.load %arg8[%c0_33, %c0_34, %c0_35] : memref<4x8x1xf32, #tpu.memory_space<vmem>>, vector<4x8x1xf32>
      %35 = tpu.reciprocal %34 {approx = true} : vector<4x8x1xf32> -> vector<4x8x1xf32>
      %c0_36 = arith.constant 0 : index
      %c0_37 = arith.constant 0 : index
      %c0_38 = arith.constant 0 : index
      %36 = vector.load %arg9[%c0_36, %c0_37, %c0_38] : memref<4x8x8xf32, #tpu.memory_space<vmem>>, vector<4x8x8xf32>
      %37 = vector.broadcast %35 : vector<4x8x1xf32> to vector<4x8x8xf32>
      %38 = arith.mulf %36, %37 : vector<4x8x8xf32>
      %c0_39 = arith.constant 0 : index
      %c0_40 = arith.constant 0 : index
      %c0_41 = arith.constant 0 : index
      %39 = vector.load %arg6[%c0_39, %c0_40, %c0_41] : memref<4x8x8xf32, #tpu.memory_space<vmem>>, vector<4x8x8xf32>
      tpu.vector_store %arg6[%c0_39, %c0_40, %c0_41], %38 {strides = array<i32>} : memref<4x8x8xf32, #tpu.memory_space<vmem>>, vector<4x8x8xf32>,
    } else {
    }
    return
  }
  func.func @transform_0(%arg0: i32, %arg1: i32, %arg2: i32) -> (i32, i32, i32) {
    %c0_i32 = arith.constant 0 : i32
    %c0_i32_0 = arith.constant 0 : i32
    return %arg0, %arg1, %c0_i32 : i32, i32, i32
  }
  func.func @transform_1(%arg0: i32, %arg1: i32, %arg2: i32) -> (i32, i32, i32) {
    %c0_i32 = arith.constant 0 : i32
    %c0_i32_0 = arith.constant 0 : i32
    return %arg0, %arg2, %c0_i32 : i32, i32, i32
  }
  func.func @transform_2(%arg0: i32, %arg1: i32, %arg2: i32) -> (i32, i32, i32) {
    %c0_i32 = arith.constant 0 : i32
    %c0_i32_0 = arith.constant 0 : i32
    return %arg0, %arg2, %c0_i32 : i32, i32, i32
  }
  func.func @transform_3(%arg0: i32, %arg1: i32, %arg2: i32) -> (i32, i32, i32) {
    %c0_i32 = arith.constant 0 : i32
    %c0_i32_0 = arith.constant 0 : i32
    return %arg0, %arg1, %c0_i32 : i32, i32, i32
  }
}

module attributes {stable_mosaic.version = 11 : i64} {
  func.func @_linear_kernel(%arg0: i32, %arg1: memref<16x32xf32, #tpu.memory_space<vmem>>, %arg2: memref<32x32xf32, #tpu.memory_space<vmem>>, %arg3: memref<1x32xf32, #tpu.memory_space<vmem>>, %arg4: memref<16x32xf32, #tpu.memory_space<vmem>>) attributes {dimension_semantics = [#tpu.dimension_semantics<parallel>], iteration_bounds = array<i64: 1>, scalar_prefetch = 0 : i64, scratch_operands = 0 : i64, tpu.core_type = #tpu.core_type<tc>, window_params = [{transform_indices = @transform_0, window_bounds = array<i64: 16, 32>}, {pipeline_mode = #tpu.pipeline_mode<synchronous>, transform_indices = @transform_1, window_bounds = array<i64: 32, 32>}, {pipeline_mode = #tpu.pipeline_mode<synchronous>, transform_indices = @transform_2, window_bounds = array<i64: 1, 32>}, {transform_indices = @transform_3, window_bounds = array<i64: 16, 32>}]} {
    %c0 = arith.constant 0 : index
    %c0_0 = arith.constant 0 : index
    %0 = vector.load %arg1[%c0, %c0_0] : memref<16x32xf32, #tpu.memory_space<vmem>>, vector<16x32xf32>
    %c0_1 = arith.constant 0 : index
    %c0_2 = arith.constant 0 : index
    %1 = vector.load %arg2[%c0_1, %c0_2] : memref<32x32xf32, #tpu.memory_space<vmem>>, vector<32x32xf32>
    %cst = arith.constant dense<0.000000e+00> : vector<16x32xf32>
    %2 = tpu.matmul %0, %1, %cst {dimension_numbers = #tpu.dot_dimension_numbers<[1], [0], [0], [1], [0, 0, 1, 1], [], []>} : vector<16x32xf32>, vector<32x32xf32>, vector<16x32xf32> -> vector<16x32xf32>
    %c0_3 = arith.constant 0 : index
    %c0_4 = arith.constant 0 : index
    %3 = vector.load %arg3[%c0_3, %c0_4] : memref<1x32xf32, #tpu.memory_space<vmem>>, vector<1x32xf32>
    %4 = vector.broadcast %3 : vector<1x32xf32> to vector<16x32xf32>
    %5 = arith.addf %2, %4 : vector<16x32xf32>
    %c0_5 = arith.constant 0 : index
    %c0_6 = arith.constant 0 : index
    %6 = vector.load %arg4[%c0_5, %c0_6] : memref<16x32xf32, #tpu.memory_space<vmem>>, vector<16x32xf32>
    tpu.vector_store %arg4[%c0_5, %c0_6], %5 {strides = array<i32>} : memref<16x32xf32, #tpu.memory_space<vmem>>, vector<16x32xf32>,
    return
  }
  func.func @transform_0(%arg0: i32) -> (i32, i32) {
    %c0_i32 = arith.constant 0 : i32
    %c0_i32_0 = arith.constant 0 : i32
    return %arg0, %c0_i32 : i32, i32
  }
  func.func @transform_1(%arg0: i32) -> (i32, i32) {
    %c0_i32 = arith.constant 0 : i32
    %c0_i32_0 = arith.constant 0 : i32
    %c0_i32_1 = arith.constant 0 : i32
    return %c0_i32, %c0_i32_0 : i32, i32
  }
  func.func @transform_2(%arg0: i32) -> (i32, i32) {
    %c0_i32 = arith.constant 0 : i32
    %c0_i32_0 = arith.constant 0 : i32
    %c0_i32_1 = arith.constant 0 : i32
    return %c0_i32, %c0_i32_0 : i32, i32
  }
  func.func @transform_3(%arg0: i32) -> (i32, i32) {
    %c0_i32 = arith.constant 0 : i32
    %c0_i32_0 = arith.constant 0 : i32
    return %arg0, %c0_i32 : i32, i32
  }
}

</mosaic_0001>

<bundles_post_ra>
// kernel: multihead_attention.5
= control target key start
LH: loop header
LB: loop body
LE: loop exit
PB: predicated region body
PF: predicated region fallthrough
CT: control target
= control target key end

     0   :  { %vm28_vm0 = vcmask 261120   ;;  %s243_s0 = inlined_call_operand.vmem [shape: f32[16,32], index: 0, kind: input, shape index: {}]   ;;  %s244_s1 = inlined_call_operand.vmem [shape: f32[32,32], index: 1, kind: input, shape index: {}]   ;;  %s245_s2 = inlined_call_operand.vmem [shape: f32[1,32], index: 2, kind: input, shape index: {}]   ;;  %s246_s3 = inlined_call_operand.hbm [shape: f32[16,32], index: 3, kind: output, shape index: {}]  }
   0x1   :  { %v17_v0 = vld [vmem:[%s244_s1] sm:$0xff]  ;;  %v18_v1 = vld [vmem:[%s244_s1 + $0x8] sm:$0xff]  ;;  %v19_v2 = vld [vmem:[%s244_s1 + $0x10] sm:$0xff] }
   0x2   :  { %v148_v3 = vpack.c.bf16 %v18_v1, %v17_v0  ;;  %v20_v4 = vld [vmem:[%s244_s1 + $0x18] sm:$0xff]  ;;  %v15_v5 = vld [vmem:[%s243_s0] sm:$0xff] }
   0x3   :  { %v152_v6 = vpack.c.bf16 %v20_v4, %v19_v2  ;;  %145 = vmatprep.mubr.msk.f32.mxu0 %vm28_vm0, %v15_v5 }
   0x4   :  { %8 = vsyncpa [#allocation3], 0  ;;  %149 = vmatprep.subr.bf16.mxu0 %v148_v3  ;;  %v16_v7 = vld [vmem:[%s243_s0 + $0x8] sm:$0xff]  ;;  %v128_v8 = vld [vmem:[%s245_s2] ss:$0 sm:$0xff]  ;;  %s183_s25 = smov [#allocation2]  }
   0x5   :  { %151 = vmatpush3.bf16.msra.mxu0 %v148_v3  ;;  %s117_s26 = sshll.u32 %s183_s25, 4  ;;  %s118_s26 = int_to_ptr.vmem [resolvable:$true] %s117_s26 }
   0x6   :  { %153 = vmatprep.subr.bf16.mxu0 %v152_v6  ;;  %s159_s27 = scalar_lea.vmem %s118_s26, 256  ;;  %p164_p1 = scmp.lt.s32.totalorder %s118_s26, %s118_s26 }
   0x7   :  { %p160_p0 = scmp.ne.s32.totalorder %s118_s26, %s159_s27  ;;  %p165_p2 = scmp.lt.s32.totalorder %s159_s27, %s159_s27 }
   0x9   :  { %155 = vmatpush3.bf16.msra.mxu0 %v152_v6  ;;  %p166_p3 = por %p165_p2, %p164_p1 }
   0xb   :  { %p167_p4 = pnand %p166_p3, %p160_p0 }
   0xc   :  { %146 = vmatmul.mubr.msk.f32.vlgmr.msra.gmra.mrb[0].mxu0 %vm28_vm0, %v16_v7 }
  0xdf   :  { %v147_v9 = vpop.f32.mrb[0].mxu0 }
  0xe0   :  { %v107_v10 = vadd.f32 %v147_v9, %v128_v8  ;;  %v101_v11 = vpop.f32.mrb[1].mxu0 }
  0xe1   :  { %v102_v12 = vadd.f32 %v128_v8, %v101_v11 }
  0xe2   :  { %111 = vst.msk [vmem:[#allocation2 + $0x8] sm:$0xff] %vm28_vm0, %v107_v10 }
  0xe3   :  { %110 = vst.msk [vmem:[#allocation2] sm:$0xff] %vm28_vm0, %v102_v12 }
  0xe4   :  { %170 = shalt.err (!%p167_p4)
}
  0xe5   :  { %s171_s28 = scalar_lea.hbm %s246_s3, 256 }
  0xe6   :  { %p172_p5 = scmp.ne.s32.totalorder %s246_s3, %s171_s28  ;;  %p175_p6 = scmp.lt.u32.totalorder %s171_s28, %s246_s3 }
  0xe8   :  { %p177_p7 = pnand %p175_p6, %p172_p5 }
  0xea   :  { %180 = shalt.err (!%p177_p7)
}
  0xeb   :  { %s184_s6 = smov 128   ;;  %s185_s7 = smov 8  }
  0xec   :  { %123 = dma.vmem_to_hbm [thread:$0]  %s118_s26, 256, %s246_s3, [#allocation3], %s184_s6, %s184_s6, %s185_s7  }
  0xed   :  { %181 = dma.done.wait [#allocation3], 256  }
  0xee   :  { %182 = vsyncadd [#allocation3], 4294967040 }
  0xef   :  { %127 = vsyncpa [#allocation3], 1 }

// kernel: multihead_attention.3
= control target key start
LH: loop header
LB: loop body
LE: loop exit
PB: predicated region body
PF: predicated region fallthrough
CT: control target
= control target key end

     0   :  { %vm47_vm0 = vcmask 261120   ;;  %s551_s2 = inlined_call_operand.vmem [shape: f32[32,32], index: 2, kind: input, shape index: {}]   ;;  %s552_s0 = inlined_call_operand.vmem [shape: f32[16,32], index: 0, kind: input, shape index: {}]   ;;  %s553_s4 = inlined_call_operand.vmem [shape: f32[32,32], index: 4, kind: input, shape index: {}]   ;;  %s554_s6 = inlined_call_operand.vmem [shape: f32[32,32], index: 6, kind: input, shape index: {}]   ;;  %s555_s1 = inlined_call_operand.vmem [shape: f32[16,32], index: 1, kind: input, shape index: {}]   ;;  %s556_s3 = inlined_call_operand.vmem [shape: f32[1,32], index: 3, kind: input, shape index: {}]   ;;  %s557_s5 = inlined_call_operand.vmem [shape: f32[1,32], index: 5, kind: input, shape index: {}]   ;;  %s558_s8 = inlined_call_operand.vmem [shape: f32[16,32], index: 8, kind: output, shape index: {0}]   ;;  %s559_s9 = inlined_call_operand.vmem [shape: f32[16,32], index: 9, kind: output, shape index: {1}]   ;;  %s560_s7 = inlined_call_operand.vmem [shape: f32[1,32], index: 7, kind: input, shape index: {}]   ;;  %s561_s10 = inlined_call_operand.vmem [shape: f32[16,32], index: 10, kind: output, shape index: {2}]  }
   0x1   :  { %v36_v0 = vld [vmem:[%s551_s2] sm:$0xff]  ;;  %v37_v1 = vld [vmem:[%s551_s2 + $0x8] sm:$0xff]  ;;  %v38_v2 = vld [vmem:[%s551_s2 + $0x10] sm:$0xff] }
   0x2   :  { %v385_v3 = vpack.c.bf16 %v37_v1, %v36_v0  ;;  %v39_v4 = vld [vmem:[%s551_s2 + $0x18] sm:$0xff]  ;;  %v32_v5 = vld [vmem:[%s552_s0] sm:$0xff]  ;;  %v132_v8 = vld [vmem:[%s553_s4 + $0x8] sm:$0xff] }
   0x3   :  { %v389_v6 = vpack.c.bf16 %v39_v4, %v38_v2  ;;  %360 = vmatprep.mubr.msk.f32.mxu0 %vm47_vm0, %v32_v5  ;;  %v131_v7 = vld [vmem:[%s553_s4] sm:$0xff]  ;;  %v226_v11 = vld [vmem:[%s554_s6 + $0x8] sm:$0xff]  ;;  %v133_v12 = vld [vmem:[%s553_s4 + $0x10] sm:$0xff] }
   0x4   :  { %v225_v9 = vld [vmem:[%s554_s6] sm:$0xff]  ;;  %386 = vmatprep.subr.bf16.mxu0 %v385_v3  ;;  %v393_v10 = vpack.c.bf16 %v132_v8, %v131_v7  ;;  %v134_v13 = vld [vmem:[%s553_s4 + $0x18] sm:$0xff]  ;;  %v227_v17 = vld [vmem:[%s554_s6 + $0x10] sm:$0xff] }
   0x5   :  { %388 = vmatpush3.bf16.msra.mxu0 %v385_v3  ;;  %v397_v14 = vpack.c.bf16 %v134_v13, %v133_v12  ;;  %v34_v15 = vld [vmem:[%s555_s1] sm:$0xff]  ;;  %v401_v16 = vpack.c.bf16 %v226_v11, %v225_v9  ;;  %v228_v18 = vld [vmem:[%s554_s6 + $0x18] sm:$0xff]  ;;  %v33_v19 = vld [vmem:[%s552_s0 + $0x8] sm:$0xff] }
   0x6   :  { %390 = vmatprep.subr.bf16.mxu0 %v389_v6  ;;  %394 = vmatprep.subr.bf16.mxu1 %v393_v10  ;;  %v405_v20 = vpack.c.bf16 %v228_v18, %v227_v17  ;;  %v35_v21 = vld [vmem:[%s555_s1 + $0x8] sm:$0xff]  ;;  %v325_v22 = vld [vmem:[%s556_s3] ss:$0 sm:$0xff] }
   0x7   :  { %396 = vmatpush3.bf16.msra.mxu1 %v393_v10  ;;  %371 = vmatprep.mubr.msk.f32.mxu1 %vm47_vm0, %v34_v15  ;;  %v328_v24 = vld [vmem:[%s557_s5] ss:$0 sm:$0xff] }
   0x8   :  { %398 = vmatprep.subr.bf16.mxu1 %v397_v14  ;;  %v331_v32 = vld [vmem:[%s560_s7] ss:$0 sm:$0xff] }
   0x9   :  { %392 = vmatpush3.bf16.msra.mxu0 %v389_v6 }
   0xa   :  { %402 = vmatprep.subr.bf16.mxu0 %v401_v16 }
   0xb   :  { %400 = vmatpush3.bf16.msra.mxu1 %v397_v14 }
   0xc   :  { %361 = vmatmul.mubr.msk.f32.vlgmr.msra.gmra.mrb[0].mxu0 %vm47_vm0, %v33_v19 }
   0xd   :  { %404 = vmatpush3.bf16.msra.mxu0 %v401_v16  ;;  %382 = vmatprep.mubr.msk.f32.mxu0 %vm47_vm0, %v34_v15 }
   0xe   :  { %406 = vmatprep.subr.bf16.mxu0 %v405_v20  ;;  %372 = vmatmul.mubr.msk.f32.vlgmr.msra.gmra.mrb[0].mxu1 %vm47_vm0, %v35_v21 }
  0x11   :  { %408 = vmatpush3.bf16.msra.mxu0 %v405_v20 }
  0x14   :  { %383 = vmatmul.mubr.msk.f32.vlgmr.msra.gmra.mrb[2].mxu0 %vm47_vm0, %v35_v21 }
  0xdf   :  { %v362_v23 = vpop.f32.mrb[0].mxu0 }
  0xe0   :  { %v126_v25 = vadd.f32 %v362_v23, %v325_v22  ;;  %v120_v26 = vpop.f32.mrb[1].mxu0 }
  0xe1   :  { %v121_v27 = vadd.f32 %v325_v22, %v120_v26  ;;  %v373_v28 = vpop.f32.mrb[0].mxu1 }
  0xe2   :  { %130 = vst.msk [vmem:[%s558_s8 + $0x8] sm:$0xff] %vm47_vm0, %v126_v25  ;;  %v220_v29 = vadd.f32 %v373_v28, %v328_v24  ;;  %v214_v30 = vpop.f32.mrb[1].mxu1 }
  0xe3   :  { %129 = vst.msk [vmem:[%s558_s8] sm:$0xff] %vm47_vm0, %v121_v27  ;;  %v215_v31 = vadd.f32 %v328_v24, %v214_v30 }
  0xe4   :  { %224 = vst.msk [vmem:[%s559_s9 + $0x8] sm:$0xff] %vm47_vm0, %v220_v29 }
  0xe5   :  { %223 = vst.msk [vmem:[%s559_s9] sm:$0xff] %vm47_vm0, %v215_v31 }
  0xe7   :  { %v384_v33 = vpop.f32.mrb[2].mxu0 }
  0xe8   :  { %v308_v34 = vadd.f32 %v384_v33, %v331_v32  ;;  %v302_v35 = vpop.f32.mrb[3].mxu0 }
  0xe9   :  { %v303_v36 = vadd.f32 %v331_v32, %v302_v35 }
  0xea   :  { %312 = vst.msk [vmem:[%s561_s10 + $0x8] sm:$0xff] %vm47_vm0, %v308_v34 }
  0xeb   :  { %311 = vst.msk [vmem:[%s561_s10] sm:$0xff] %vm47_vm0, %v303_v36 }

// kernel: multihead_attention.4
= control target key start
LH: loop header
LB: loop body
LE: loop exit
PB: predicated region body
PF: predicated region fallthrough
CT: control target
= control target key end

     0   :  { %s1381_s12 = smov 0   ;;  %s1383_s13 = smov 0   ;;  %s1530_s0 = inlined_call_operand.vmem [shape: f32[8,8,8], index: 0, kind: input, shape index: {}]   ;;  %s1531_s1 = inlined_call_operand.vmem [shape: f32[8,8,8], index: 1, kind: input, shape index: {}]   ;;  %s1532_s2 = inlined_call_operand.vmem [shape: f32[8,8,8], index: 2, kind: input, shape index: {}]   ;;  %s1533_s3 = inlined_call_operand.vmem [shape: f32[8,8,8], index: 3, kind: output, shape index: {}]  }
   0x1   :  { %s1385_s14 = smov 0  }
   0x2 LB: > { %s32_s15 = sadd.s32 1, %s1351_s13  ;;  %p1200_p0 = scmp.ge.s32.totalorder %s1355_s14, 1  ;;  %s1355_s14 = sphi %s1385_s14, %s13_s14   ;;  %s1351_s13 = sphi %s1383_s13, %s1535_s13   ;;  %s1347_s12 = sphi %s1381_s12, %s1534_s12  }
   0x3   : > { %p34_p1 = scmp.ge.s32.totalorder %s32_s15, 2  ;;  %p196_p2 = scmp.lt.s32.totalorder %s1355_s14, 3 }
   0x5   : > { %s1537_s15 = smov (%p34_p1, %s32_s15), 0  ;;  %p197_p3 = pnand %p1200_p0, %p196_p2 }
   0x6   : > { %s1201_s16 = sshll.u32 (!%p197_p3), %s1347_s12, 2  ;;  %vm291_vm0 = vcmask (!%p197_p3), 64512   ;;  %v1357_v0 = vmov (!%p197_p3), 0.0   ;;  %vm1358_vm1 = vmmov (!%p197_p3), 0   ;;  %vm282_vm2 = vcmask (!%p197_p3), 7168  }
   0x7   : > { %200 = sbr.rel (%p197_p3) target bundleno = 828 (0x33c), region = 32  ;;  %1239 = vmatprep.subr.mxu0 (!%p197_p3), %v1357_v0  ;;  %p243_p4 = scmp.lt.s32.totalorder (!%p197_p3), %s1201_s16, 7  ;;  %292 = vst.msk [vmem:[#allocation4] sm:$0xff] (!%p197_p3), %vm291_vm0, %v1357_v0  ;;  %293 = vst.msk [vmem:[#allocation4 + $0x8] sm:$0xff] (!%p197_p3), %vm291_vm0, %v1357_v0  ;;  %1241 = vmatprep.mubr.msk.f32.mxu0 (!%p197_p3), %vm1358_vm1, %v1357_v0  ;;  %v1359_v13 = vmov (!%p197_p3), -inf   ;;  %v1360_v26 = vmov (!%p197_p3), 0  }
   0x8   : > { %294 = vst.msk [vmem:[#allocation4 + $0x10] sm:$0xff] (!%p197_p3), %vm291_vm0, %v1357_v0  ;;  %295 = vst.msk [vmem:[#allocation4 + $0x18] sm:$0xff] (!%p197_p3), %vm291_vm0, %v1357_v0  ;;  %1244 = vmatprep.subr.mxu1 (!%p197_p3), %v1357_v0  ;;  %1246 = vmatprep.mubr.msk.f32.mxu1 (!%p197_p3), %vm1358_vm1, %v1357_v0 }
   0x9   : > { %283 = vst.msk [vmem:[#allocation2] sm:$0xff] (!%p197_p3), %vm282_vm2, %v1359_v13  ;;  %284 = vst.msk [vmem:[#allocation2 + $0x8] sm:$0xff] (!%p197_p3), %vm282_vm2, %v1359_v13  ;;  %1307 = vset.pattern.permute.xlu0 (!%p197_p3), %v1360_v26  ;;  %1308 = vset.pattern.permute.xlu1 (!%p197_p3), %v1360_v26 }
   0xa   : > { %285 = vst.msk [vmem:[#allocation2 + $0x10] sm:$0xff] (!%p197_p3), %vm282_vm2, %v1359_v13  ;;  %286 = vst.msk [vmem:[#allocation2 + $0x18] sm:$0xff] (!%p197_p3), %vm282_vm2, %v1359_v13 }
   0xb   : > { %287 = vst.msk [vmem:[#allocation3] sm:$0xff] (!%p197_p3), %vm282_vm2, %v1357_v0  ;;  %288 = vst.msk [vmem:[#allocation3 + $0x8] sm:$0xff] (!%p197_p3), %vm282_vm2, %v1357_v0 }
   0xc   : > { %289 = vst.msk [vmem:[#allocation3 + $0x10] sm:$0xff] (!%p197_p3), %vm282_vm2, %v1357_v0  ;;  %290 = vst.msk [vmem:[#allocation3 + $0x18] sm:$0xff] (!%p197_p3), %vm282_vm2, %v1357_v0 }
   0xe   : > { %s1539_s16 = smov (!%p243_p4, %s1201_s16), 7 }
   0xf   : > { %s1413_s17 = sshll.u32 %s1539_s16, 3 }
  0x10   : > { %s258_s20 = scalar_lea.vmem %s1531_s1, %s1413_s17  ;;  %s249_s23 = scalar_lea.vmem %s1530_s0, %s1413_s17  ;;  %v1459_v27 = vld [vmem:[#allocation2] sm:$0xff]  ;;  %v1464_v30 = vld [vmem:[#allocation2 + $0x8] sm:$0xff] }
  0x11   : > { %v304_v1 = vld [vmem:[%s258_s20] sm:$0xff]  ;;  %v305_v3 = vld [vmem:[%s258_s20 + $0x8] sm:$0xff]  ;;  %v298_v6 = vld [vmem:[%s249_s23 + $0x10] sm:$0xff]  ;;  %s267_s26 = scalar_lea.vmem %s1532_s2, %s1413_s17  ;;  %s276_s29 = scalar_lea.vmem %s1533_s3, %s1413_s17 }
  0x12   : > { %v296_v2 = vld [vmem:[%s249_s23] sm:$0xff]  ;;  %1240 = vmatpush3.xpose.msk.msra.mxu0 %vm291_vm0, %v304_v1  ;;  %1245 = vmatpush3.xpose.msk.msra.mxu1 %vm291_vm0, %v305_v3  ;;  %v297_v5 = vld [vmem:[%s249_s23 + $0x8] sm:$0xff]  ;;  %v306_v8 = vld [vmem:[%s258_s20 + $0x10] sm:$0xff]  ;;  %v302_v11 = vmul.f32 0.17677669, %v298_v6 }
  0x13   : > { %v300_v4 = vmul.f32 0.17677669, %v296_v2  ;;  %v301_v7 = vmul.f32 0.17677669, %v297_v5  ;;  %1249 = vmatprep.subr.mxu0 %v1357_v0  ;;  %1254 = vmatprep.subr.mxu1 %v1357_v0  ;;  %v299_v9 = vld [vmem:[%s249_s23 + $0x18] sm:$0xff]  ;;  %v1466_v31 = vld [vmem:[#allocation2 + $0x10] sm:$0xff] }
  0x14   : > { %v307_v10 = vld [vmem:[%s258_s20 + $0x18] sm:$0xff]  ;;  %v303_v12 = vmul.f32 0.17677669, %v299_v9  ;;  %v308_v43 = vld [vmem:[%s267_s26] sm:$0xff]  ;;  %v309_v44 = vld [vmem:[%s267_s26 + $0x8] sm:$0xff] }
  0x15   : > { %1242 = vmatmul.mubr.msk.f32.vlgmr.msra.gmra.mrb[0].mxu0 %vm291_vm0, %v300_v4  ;;  %1247 = vmatmul.mubr.msk.f32.vlgmr.msra.gmra.mrb[0].mxu1 %vm291_vm0, %v301_v7  ;;  %v1475_v37 = vld [vmem:[#allocation2 + $0x18] sm:$0xff]  ;;  %v310_v56 = vld [vmem:[%s267_s26 + $0x10] sm:$0xff] }
  0x16   : > { %1250 = vmatpush3.xpose.msk.msra.mxu0 %vm291_vm0, %v306_v8  ;;  %1251 = vmatprep.mubr.msk.f32.mxu0 %vm1358_vm1, %v1357_v0  ;;  %v311_v60 = vld [vmem:[%s267_s26 + $0x18] sm:$0xff] }
  0x17   : > { %1255 = vmatpush3.xpose.msk.msra.mxu1 %vm291_vm0, %v307_v10  ;;  %1256 = vmatprep.mubr.msk.f32.mxu1 %vm1358_vm1, %v1357_v0 }
  0x18   : > { %1259 = vmatprep.subr.mxu0 %v1357_v0  ;;  %1264 = vmatprep.subr.mxu1 %v1357_v0 }
  0x19   : > { %1252 = vmatmul.mubr.msk.f32.vlgmr.msra.gmra.mrb[2].mxu0 %vm291_vm0, %v302_v11  ;;  %v681_v11 = vld [vmem:[#allocation3] sm:$0xff] }
  0x1a   : > { %1257 = vmatmul.mubr.msk.f32.vlgmr.msra.gmra.mrb[2].mxu1 %vm291_vm0, %v303_v12  ;;  %1261 = vmatprep.mubr.msk.f32.mxu0 %vm1358_vm1, %v1357_v0 }
  0x1b   : > { %1266 = vmatprep.mubr.msk.f32.mxu1 %vm1358_vm1, %v1357_v0  ;;  %1260 = vmatpush3.msra.mxu0 %v308_v43 }
  0x1c   : > { %1269 = vmatprep.subr.mxu0 %v1357_v0  ;;  %1265 = vmatpush3.msra.mxu1 %v309_v44 }
  0x1d   : > { %1274 = vmatprep.subr.mxu1 %v1357_v0 }
  0xe8   : > { %v385_v14 = vpop.f32.mrb[0].mxu0  ;;  %v461_v15 = vpop.f32.mrb[0].mxu1 }
  0xe9   : > { %v1243_v16 = vpop.f32.mrb[1].mxu0  ;;  %v621_v17 = vsel %vm291_vm0, %v385_v14, -inf  ;;  %v1248_v18 = vpop.f32.mrb[1].mxu1  ;;  %v624_v19 = vsel %vm291_vm0, %v461_v15, -inf }
  0xea   : > { %622 = vmax.xlane.f32.xlu0 %v621_v17  ;;  %v683_v18 = vld [vmem:[#allocation3 + $0x10] sm:$0xff] }
  0xec   : > { %v537_v20 = vpop.f32.mrb[2].mxu0 }
  0xed   : > { %v1253_v21 = vpop.f32.mrb[3].mxu0  ;;  %v627_v22 = vsel %vm291_vm0, %v537_v20, -inf  ;;  %v613_v23 = vpop.f32.mrb[2].mxu1 }
  0xee   : > { %625 = vmax.xlane.f32.xlu0 %v624_v19  ;;  %628 = vmax.xlane.f32.xlu1 %v627_v22  ;;  %v1258_v24 = vpop.f32.mrb[3].mxu1  ;;  %v630_v25 = vsel %vm291_vm0, %v613_v23, -inf  ;;  %v684_v22 = vld [vmem:[#allocation3 + $0x18] sm:$0xff] }
  0xf2   : > { %631 = vmax.xlane.f32.xlu1 %v630_v25 }
 0x177   : > { %v623_v28 = vpop.xlane.xlu0 %622 }
 0x178   : > { %v1462_v29 = vmax.f32 %v1459_v27, %v623_v28 }
 0x17a   : > { %v637_v32 = vsub.f32 %v1459_v27, %v1462_v29  ;;  %1038 = vst.msk [vmem:[#allocation2] sm:$0xff] %vm282_vm2, %v1462_v29  ;;  %651 = vperm.xlu0 %1307, %v1462_v29  }
 0x17b   : > { %v626_v33 = vpop.xlane.xlu0 %625  ;;  %v629_v34 = vpop.xlane.xlu1 %628 }
 0x17c   : > { %v634_v35 = vmax.f32 %v1464_v30, %v626_v33  ;;  %v635_v36 = vmax.f32 %v1466_v31, %v629_v34  ;;  %v641_v5 = vmul.f32 1.442695, %v637_v32 }
 0x17e   : > { %v638_v38 = vsub.f32 %v1464_v30, %v634_v35  ;;  %1039 = vst.msk [vmem:[#allocation2 + $0x8] sm:$0xff] %vm282_vm2, %v634_v35  ;;  %656 = vperm.xlu1 %1308, %v634_v35   ;;  %v639_v39 = vsub.f32 %v1466_v31, %v635_v36  ;;  %1040 = vst.msk [vmem:[#allocation2 + $0x10] sm:$0xff] %vm282_vm2, %v635_v36  ;;  %v710_v35 = vld [vmem:[#allocation4] sm:$0xff] }
 0x17f   : > { %v632_v40 = vpop.xlane.xlu1 %631 }
 0x180   : > { %v636_v41 = vmax.f32 %v1475_v37, %v632_v40  ;;  %v643_v3 = vmul.f32 1.442695, %v638_v38  ;;  %v711_v38 = vld [vmem:[#allocation4 + $0x8] sm:$0xff] }
 0x182   : > { %661 = vperm.xlu1 %1308, %v635_v36   ;;  %v640_v42 = vsub.f32 %v1475_v37, %v636_v41  ;;  %1041 = vst.msk [vmem:[#allocation2 + $0x18] sm:$0xff] %vm282_vm2, %v636_v41 }
 0x184   : > { %v647_v6 = vmul.f32 1.442695, %v640_v42 }
 0x186   : > { %666 = vperm.xlu1 %1308, %v636_v41  }
 0x1f9   : > { %v652_v45 = vpop.permute.xlu0 %651 }
 0x1fa   : > { %v669_v46 = vsub.f32 %v385_v14, %v652_v45  ;;  %v682_v14 = vld [vmem:[#allocation3 + $0x8] sm:$0xff]  ;;  %v712_v45 = vld [vmem:[#allocation4 + $0x10] sm:$0xff] }
 0x1fc   : > { %v673_v47 = vmul.f32 1.442695, %v669_v46 }
 0x1fd   : > { %v657_v48 = vpop.permute.xlu1 %656 }
 0x1fe   : > { %1309 = vpow2.f32 %v673_v47  ;;  %v670_v49 = vsub.f32 %v461_v15, %v657_v48 }
 0x200   : > { %v675_v50 = vmul.f32 1.442695, %v670_v49 }
 0x201   : > { %v662_v51 = vpop.permute.xlu1 %661 }
 0x202   : > { %1311 = vpow2.f32 %v675_v50  ;;  %v671_v52 = vsub.f32 %v537_v20, %v662_v51  ;;  %v713_v50 = vld [vmem:[#allocation4 + $0x18] sm:$0xff] }
 0x204   : > { %v677_v53 = vmul.f32 1.442695, %v671_v52 }
 0x205   : > { %v667_v54 = vpop.permute.xlu1 %666 }
 0x206   : > { %1313 = vpow2.f32 %v677_v53  ;;  %v672_v55 = vsub.f32 %v613_v23, %v667_v54 }
 0x208   : > { %v1310_v57 = vpop.eup %1309  ;;  %v679_v58 = vmul.f32 1.442695, %v672_v55 }
 0x209   : > { %1262 = vmatmul.mubr.msk.f32.vlgmr.msra.gmra.mrb[4].mxu0 %vm291_vm0, %v1310_v57  ;;  %v689_v59 = vsel %vm291_vm0, %v1310_v57, 0.0 }
 0x20a   : > { %1315 = vpow2.f32 %v679_v58  ;;  %690 = vadd.xlane.f32.xlu1 %v689_v59  ;;  %1270 = vmatpush3.msra.mxu0 %v310_v56 }
 0x20b   : > { %1271 = vmatprep.mubr.msk.f32.mxu0 %vm1358_vm1, %v1357_v0  ;;  %1317 = vpow2.f32 %v643_v3 }
 0x20c   : > { %v1312_v61 = vpop.eup %1311  ;;  %1319 = vpow2.f32 %v641_v5 }
 0x20d   : > { %1267 = vmatmul.mubr.msk.f32.vlgmr.msra.gmra.mrb[4].mxu1 %vm291_vm0, %v1312_v61  ;;  %v692_v62 = vsel %vm291_vm0, %v1312_v61, 0.0 }
 0x20e   : > { %693 = vadd.xlane.f32.xlu0 %v692_v62  ;;  %1275 = vmatpush3.msra.mxu1 %v311_v60 }
 0x20f   : > { %1276 = vmatprep.mubr.msk.f32.mxu1 %vm1358_vm1, %v1357_v0  ;;  %v645_v0 = vmul.f32 1.442695, %v639_v39 }
 0x210   : > { %v1314_v63 = vpop.eup %1313 }
 0x211   : > { %1272 = vmatmul.mubr.msk.f32.vlgmr.msra.gmra.mrb[6].mxu0 %vm291_vm0, %v1314_v63  ;;  %v695_v1 = vsel %vm291_vm0, %v1314_v63, 0.0  ;;  %1321 = vpow2.f32 %v645_v0 }
 0x212   : > { %696 = vadd.xlane.f32.xlu1 %v695_v1  ;;  %1323 = vpow2.f32 %v647_v6 }
 0x214   : > { %v1316_v2 = vpop.eup %1315 }
 0x215   : > { %1277 = vmatmul.mubr.msk.f32.vlgmr.msra.gmra.mrb[6].mxu1 %vm291_vm0, %v1316_v2  ;;  %v698_v4 = vsel %vm291_vm0, %v1316_v2, 0.0  ;;  %v1318_v7 = vpop.eup %1317 }
 0x216   : > { %699 = vadd.xlane.f32.xlu1 %v698_v4  ;;  %v1320_v8 = vpop.eup %1319  ;;  %v686_v16 = vmul.f32 %v1318_v7, %v682_v14 }
 0x217   : > { %v685_v12 = vmul.f32 %v1320_v8, %v681_v11 }
 0x21b   : > { %v1322_v9 = vpop.eup %1321 }
 0x21c   : > { %v1324_v10 = vpop.eup %1323  ;;  %v687_v20 = vmul.f32 %v1322_v9, %v683_v18 }
 0x21d   : > { %v688_v25 = vmul.f32 %v1324_v10, %v684_v22 }
 0x224   : > { %721 = vperm.xlu0 %1307, %v1318_v7  }
 0x227   : > { %716 = vperm.xlu1 %1308, %v1320_v8  }
 0x22b   : > { %726 = vperm.xlu1 %1308, %v1322_v9  }
 0x22f   : > { %731 = vperm.xlu1 %1308, %v1324_v10  }
 0x297   : > { %v691_v13 = vpop.xlane.xlu1 %690 }
 0x298   : > { %v701_v15 = vadd.f32 %v691_v13, %v685_v12 }
 0x29a   : > { %706 = vst.msk [vmem:[#allocation3] sm:$0xff] %vm282_vm2, %v701_v15 }
 0x29b   : > { %v694_v17 = vpop.xlane.xlu0 %693 }
 0x29c   : > { %v702_v19 = vadd.f32 %v694_v17, %v686_v16 }
 0x29e   : > { %707 = vst.msk [vmem:[#allocation3 + $0x8] sm:$0xff] %vm282_vm2, %v702_v19 }
 0x29f   : > { %v697_v21 = vpop.xlane.xlu1 %696 }
 0x2a0   : > { %v703_v23 = vadd.f32 %v697_v21, %v687_v20 }
 0x2a1   : > { %v1045_v24 = vld [vmem:[#allocation3] sm:$0xff] }
 0x2a2   : > { %708 = vst.msk [vmem:[#allocation3 + $0x10] sm:$0xff] %vm282_vm2, %v703_v23  ;;  %1325 = vrcp.f32 %v1045_v24 }
 0x2a3   : > { %v700_v26 = vpop.xlane.xlu1 %699  ;;  %v722_v39 = vpop.permute.xlu0 %721 }
 0x2a4   : > { %v704_v27 = vadd.f32 %v700_v26, %v688_v25  ;;  %v735_v44 = vmul.f32 %v722_v39, %v711_v38 }
 0x2a5   : > { %v1046_v28 = vld [vmem:[#allocation3 + $0x8] sm:$0xff] }
 0x2a6   : > { %709 = vst.msk [vmem:[#allocation3 + $0x18] sm:$0xff] %vm282_vm2, %v704_v27  ;;  %1327 = vrcp.f32 %v1046_v28 }
 0x2a7   : > { %v717_v36 = vpop.permute.xlu1 %716 }
 0x2a8   : > { %v734_v37 = vmul.f32 %v717_v36, %v710_v35 }
 0x2a9   : > { %v1047_v29 = vld [vmem:[#allocation3 + $0x10] sm:$0xff] }
 0x2aa   : > { %1329 = vrcp.f32 %v1047_v29 }
 0x2ab   : > { %v727_v43 = vpop.permute.xlu1 %726 }
 0x2ac   : > { %v1326_v30 = vpop.eup %1325  ;;  %v736_v49 = vmul.f32 %v727_v43, %v712_v45 }
 0x2ad   : > { %1059 = vperm.xlu1 %1308, %v1326_v30   ;;  %v1048_v31 = vld [vmem:[#allocation3 + $0x18] sm:$0xff] }
 0x2ae   : > { %1331 = vrcp.f32 %v1048_v31 }
 0x2af   : > { %v732_v51 = vpop.permute.xlu1 %731 }
 0x2b0   : > { %v1328_v32 = vpop.eup %1327  ;;  %v737_v55 = vmul.f32 %v732_v51, %v713_v50 }
 0x2b1   : > { %1064 = vperm.xlu0 %1307, %v1328_v32  }
 0x2b4   : > { %v1330_v33 = vpop.eup %1329 }
 0x2b5   : > { %1069 = vperm.xlu1 %1308, %v1330_v33  }
 0x2b8   : > { %v1332_v34 = vpop.eup %1331 }
 0x2b9   : > { %1074 = vperm.xlu0 %1307, %v1332_v34  }
 0x2dc   : > { %v807_v40 = vpop.f32.mrb[4].mxu0 }
 0x2dd   : > { %v1030_v41 = vadd.f32 %v807_v40, %v734_v37  ;;  %v1263_v42 = vpop.f32.mrb[5].mxu0 }
 0x2df   : > { %1034 = vst.msk [vmem:[#allocation4] sm:$0xff] %vm291_vm0, %v1030_v41 }
 0x2e0   : > { %v880_v46 = vpop.f32.mrb[4].mxu1 }
 0x2e1   : > { %v1031_v47 = vadd.f32 %v880_v46, %v735_v44  ;;  %v1268_v48 = vpop.f32.mrb[5].mxu1 }
 0x2e3   : > { %1035 = vst.msk [vmem:[#allocation4 + $0x8] sm:$0xff] %vm291_vm0, %v1031_v47 }
 0x2e4   : > { %v953_v52 = vpop.f32.mrb[6].mxu0 }
 0x2e5   : > { %v1032_v53 = vadd.f32 %v953_v52, %v736_v49  ;;  %v1273_v54 = vpop.f32.mrb[7].mxu0 }
 0x2e6   : > { %v1053_v60 = vld [vmem:[#allocation4] sm:$0xff] }
 0x2e7   : > { %1036 = vst.msk [vmem:[#allocation4 + $0x10] sm:$0xff] %vm291_vm0, %v1032_v53 }
 0x2e8   : > { %v1026_v56 = vpop.f32.mrb[6].mxu1 }
 0x2e9   : > { %v1033_v57 = vadd.f32 %v1026_v56, %v737_v55  ;;  %v1278_v58 = vpop.f32.mrb[7].mxu1 }
 0x2ea   : > { %v1054_v62 = vld [vmem:[#allocation4 + $0x8] sm:$0xff] }
 0x2eb   : > { %1037 = vst.msk [vmem:[#allocation4 + $0x18] sm:$0xff] %vm291_vm0, %v1033_v57 }
 0x2ee   : > { %v1055_v3 = vld [vmem:[#allocation4 + $0x10] sm:$0xff] }
 0x2f2   : > { %v1056_v0 = vld [vmem:[#allocation4 + $0x18] sm:$0xff] }
 0x32c   : > { %v1060_v59 = vpop.permute.xlu1 %1059 }
 0x32d   : > { %v1077_v61 = vmul.f32 %v1060_v59, %v1053_v60 }
 0x32f   : > { %1081 = vst.msk [vmem:[%s276_s29] sm:$0xff] %vm291_vm0, %v1077_v61 }
 0x330   : > { %v1065_v63 = vpop.permute.xlu0 %1064 }
 0x331   : > { %v1078_v1 = vmul.f32 %v1065_v63, %v1054_v62 }
 0x333   : > { %1082 = vst.msk [vmem:[%s276_s29 + $0x8] sm:$0xff] %vm291_vm0, %v1078_v1 }
 0x334   : > { %v1070_v2 = vpop.permute.xlu1 %1069 }
 0x335   : > { %v1079_v4 = vmul.f32 %v1070_v2, %v1055_v3 }
 0x337   : > { %1083 = vst.msk [vmem:[%s276_s29 + $0x10] sm:$0xff] %vm291_vm0, %v1079_v4 }
 0x338   : > { %v1075_v5 = vpop.permute.xlu0 %1074 }
 0x339   : > { %v1080_v6 = vmul.f32 %v1075_v5, %v1056_v0 }
 0x33b   : > { %1084 = vst.msk [vmem:[%s276_s29 + $0x18] sm:$0xff] %vm291_vm0, %v1080_v6 }
 0x33c PF: > { %s13_s14 = sadd.s32 1, %s1355_s14   ;;  %s1534_s12 = smov %s1351_s13 }
 0x33d   : > { %p10_p5 = scmp.ge.s32.totalorder %s13_s14, 4   ;;  %s1535_s13 = smov %s1537_s15 }
 0x33f   :  { %12 = sbr.rel (!%p10_p5) target bundleno = 2 (0x2), region = 76 }

</bundles_post_ra>
